<compile_context>
chip_gen: v7x
topology: tpu7x:2x2x1
jax: 0.10.0
libtpu: 0.0.40
codegen_flags: <defaults>
</compile_context>

<pallas_src>
import functools
import math

import jax
import jax.numpy as jnp
from jax.experimental import pallas as pl
from jax.experimental.pallas import tpu as pltpu


def _round_up(x, m):
    return (x + m - 1) // m * m


def _sublane(dtype):
    # Sub-32-bit dtypes pack along sublanes: 8 rows (f32), 16 (bf16), 32 (8-bit).
    return {4: 8, 2: 16, 1: 32}[jnp.dtype(dtype).itemsize]


def _arc_subcenter_kernel(x_ref, w_ref, o_ref, *, k, tn, tc, tb, x_resident):
    # x_ref: (bp, dp) resident pre-normalized features, or (tb, dp) tile.
    # w_ref: (k, tn, dp) pre-normalized weights (norm folded in), subcenter-major.
    # o_ref: (tb, tn)  f32 max-over-subcenter cosine.
    if x_resident:
        row0 = pl.multiple_of(pl.program_id(1) * tb, tb)
        xt = x_ref[pl.ds(row0, tb), :]
    else:
        xt = x_ref[...]

    # Strip-mine the class-tile columns in 128-lane chunks so the running max
    # lives in vregs (not k read/write passes through the VMEM output block).
    for c0 in range(0, tn, tc):          # static -> unrolled
        acc = None
        for j in range(k):               # static, tiny -> unrolled
            cj = jax.lax.dot_general(
                xt, w_ref[j, pl.ds(c0, tc), :],
                dimension_numbers=(((1,), (1,)), ((), ())),
                preferred_element_type=jnp.float32)       # (tb, tc)
            acc = cj if acc is None else jnp.maximum(acc, cj)
        o_ref[:, pl.ds(c0, tc)] = acc    # single lane-aligned store per chunk


def prepare_arc_weights(weight, out_features, k, *, tn=512,
                        compute_dtype=jnp.float32, eps=1e-12):
    """One-time parameter transform (NOT per forward call).

    weight: (out_features * k, in_features), row index = class*k + subcenter.
    Returns w_knd: (k, Np, Dp) L2-normalized weights (1/||w|| folded in),
    subcenter-major, zero-padded, in compute_dtype.
    """
    n, d = out_features, weight.shape[1]
    assert weight.shape == (n * k, d)

    w = jnp.asarray(weight, jnp.float32).reshape(n, k, d).transpose(1, 0, 2)  # (k,N,D)
    inv = jax.lax.rsqrt(
        jnp.maximum(jnp.sum(w * w, axis=-1, keepdims=True), eps * eps))
    wn = w * inv                                                   # f32 normalize

    np_ = _round_up(n, max(tn, 128))
    dp = _round_up(d, 128)
    wn = jnp.pad(wn, ((0, 0), (0, np_ - n), (0, dp - d)))
    return wn.astype(compute_dtype)


def arc_margin_product_subcenter(features, w_knd, out_features, *,
                                 tb=256, tn=512, tc=128, x_dtype=None,
                                 eps=1e-12, x_resident_max_bytes=4 << 20):
    """features: (B, in_features) f32; w_knd from prepare_arc_weights."""
    b, d = features.shape
    k, np_, dp = w_knd.shape
    if x_dtype is None:
        x_dtype = w_knd.dtype
    x_dtype = jnp.dtype(x_dtype)

    tn = min(tn, np_)
    tc = min(tc, tn)
    assert np_ % tn == 0 and tn % tc == 0 and tn % 128 == 0 and dp % 128 == 0
    assert d <= dp and out_features <= np_

    sub = _sublane(x_dtype)
    tb = max(sub, min(tb, _round_up(b, sub)))
    bp = _round_up(b, tb)

    # Pre-normalize features once (f32), pad, cast to the streaming dtype.
    x = jnp.asarray(features, jnp.float32)
    xn = x * jax.lax.rsqrt(
        jnp.maximum(jnp.sum(x * x, axis=-1, keepdims=True), eps * eps))
    xn = jnp.pad(xn, ((0, bp - b), (0, dp - d))).astype(x_dtype)

    full_x_bytes = bp * dp * x_dtype.itemsize
    x_resident = full_x_bytes <= x_resident_max_bytes

    if x_resident:
        # Full-extent block, constant index_map -> DMA'd from HBM exactly once.
        x_spec = pl.BlockSpec((bp, dp), lambda jc, ib: (0, 0))
        x_block_bytes = full_x_bytes
    else:
        x_spec = pl.BlockSpec((tb, dp), lambda jc, ib: (ib, 0))
        x_block_bytes = tb * dp * x_dtype.itemsize

    kernel = functools.partial(
        _arc_subcenter_kernel, k=k, tn=tn, tc=tc, tb=tb, x_resident=x_resident)

    # VMEM budget with headroom (double-buffered blocks).
    w_block_bytes = k * tn * dp * jnp.dtype(w_knd.dtype).itemsize
    o_block_bytes = tb * tn * 4
    need = 2 * (w_block_bytes + o_block_bytes + x_block_bytes)
    vmem_limit = int(min(100 << 20, max(need + (4 << 20), 16 << 20)))

    grid = (np_ // tn, bp // tb)   # class tiles OUTER -> weights stream once

    out = pl.pallas_call(
        kernel,
        out_shape=jax.ShapeDtypeStruct((bp, np_), jnp.float32),
        grid_spec=pltpu.PrefetchScalarGridSpec(
            num_scalar_prefetch=0,
            grid=grid,
            in_specs=[
                x_spec,
                pl.BlockSpec((k, tn, dp), lambda jc, ib: (0, jc, 0)),
            ],
            out_specs=pl.BlockSpec((tb, tn), lambda jc, ib: (ib, jc)),
        ),
        compiler_params=pltpu.CompilerParams(
            # Megacore (v7x) shards the class axis; each TC sees half the
            # weight slab instead of re-streaming all of it.
            dimension_semantics=("parallel", "arbitrary"),
            vmem_limit_bytes=vmem_limit),
    )(xn, w_knd)

    return out[:b, :out_features]


def _reference(features, weight, out_features, k):
    # Pure-JAX mirror of the PyTorch module.
    eps = 1e-12
    xn = features / jnp.maximum(
        jnp.linalg.norm(features, axis=-1, keepdims=True), eps)
    wn = weight / jnp.maximum(
        jnp.linalg.norm(weight, axis=-1, keepdims=True), eps)
    cos_all = (xn @ wn.T).reshape(-1, out_features, k)
    return jnp.max(cos_all, axis=2)


if __name__ == "__main__":
    # Small, deliberately non-128-aligned shapes to exercise the padding path.
    B, IN_FEATURES, OUT_FEATURES, K = 12, 200, 300, 3

    key = jax.random.PRNGKey(0)
    kx, kw = jax.random.split(key)
    features = jax.random.normal(kx, (B, IN_FEATURES), dtype=jnp.float32)

    # Deterministic init matching reset_parameters(): U(-stdv, stdv).
    stdv = 1.0 / math.sqrt(IN_FEATURES)
    weight = jax.random.uniform(
        kw, (OUT_FEATURES * K, IN_FEATURES),
        minval=-stdv, maxval=stdv, dtype=jnp.float32)

    ref = _reference(features, weight, OUT_FEATURES, K)

    # f32 path, grid-resident features.
    w_f32 = prepare_arc_weights(
        weight, OUT_FEATURES, K, tn=128, compute_dtype=jnp.float32)
    out = arc_margin_product_subcenter(
        features, w_f32, OUT_FEATURES, tb=128, tn=128)
    out = jax.block_until_ready(out)
    assert out.shape == (B, OUT_FEATURES)
    assert jnp.allclose(out, ref, atol=1e-3, rtol=1e-3), \
        float(jnp.max(jnp.abs(out - ref)))

    # f32 path, batch-tiled feature streaming (force the fallback spec).
    out_t = arc_margin_product_subcenter(
        features, w_f32, OUT_FEATURES, tb=128, tn=128, x_resident_max_bytes=0)
    out_t = jax.block_until_ready(out_t)
    assert jnp.allclose(out_t, ref, atol=1e-3, rtol=1e-3)

    # bf16 streaming path (production default on v5e/v6e: halves HBM traffic;
    # accumulation stays f32).
    w_bf = prepare_arc_weights(
        weight, OUT_FEATURES, K, tn=128, compute_dtype=jnp.bfloat16)
    out_bf = arc_margin_product_subcenter(
        features, w_bf, OUT_FEATURES, tb=128, tn=128)
    out_bf = jax.block_until_ready(out_bf)
    assert jnp.allclose(out_bf, ref, atol=2e-2, rtol=2e-2)

    print("KERNEL_OK")
</pallas_src>

<mosaic_0001>
module attributes {stable_mosaic.version = 11 : i64} {
  func.func @_arc_subcenter_kernel(%arg0: i32, %arg1: i32, %arg2: memref<16x256xf32, #tpu.memory_space<vmem>>, %arg3: memref<3x128x256xf32, #tpu.memory_space<vmem>>, %arg4: memref<16x128xf32, #tpu.memory_space<vmem>>) attributes {dimension_semantics = [#tpu.dimension_semantics<parallel>, #tpu.dimension_semantics<arbitrary>], iteration_bounds = array<i64: 3, 1>, scalar_prefetch = 0 : i64, scratch_operands = 0 : i64, tpu.core_type = #tpu.core_type<tc>, window_params = [{pipeline_mode = #tpu.pipeline_mode<synchronous>, transform_indices = @transform_0, window_bounds = array<i64: 16, 256>}, {transform_indices = @transform_1, window_bounds = array<i64: 3, 128, 256>}, {transform_indices = @transform_2, window_bounds = array<i64: 16, 128>}]} {
    %c16_i32 = arith.constant 16 : i32
    %0 = arith.muli %arg1, %c16_i32 : i32
    %1 = tpu.assume_multiple %0, 16 : i32
    %2 = arith.index_cast %1 : i32 to index
    %c0 = arith.constant 0 : index
    %3 = vector.load %arg2[%2, %c0] : memref<16x256xf32, #tpu.memory_space<vmem>>, vector<16x256xf32>
    %c0_0 = arith.constant 0 : index
    %c0_1 = arith.constant 0 : index
    %c0_2 = arith.constant 0 : index
    %4 = vector.load %arg3[%c0_0, %c0_1, %c0_2] : memref<3x128x256xf32, #tpu.memory_space<vmem>>, vector<1x128x256xf32>
    %5 = vector.shape_cast %4 : vector<1x128x256xf32> to vector<128x256xf32>
    %cst = arith.constant dense<0.000000e+00> : vector<16x128xf32>
    %6 = tpu.matmul %3, %5, %cst {dimension_numbers = #tpu.dot_dimension_numbers<[1], [1], [0], [0], [0, 0, 1, 0], [], []>} : vector<16x256xf32>, vector<128x256xf32>, vector<16x128xf32> -> vector<16x128xf32>
    %c1 = arith.constant 1 : index
    %c0_3 = arith.constant 0 : index
    %c0_4 = arith.constant 0 : index
    %7 = vector.load %arg3[%c1, %c0_3, %c0_4] : memref<3x128x256xf32, #tpu.memory_space<vmem>>, vector<1x128x256xf32>
    %8 = vector.shape_cast %7 : vector<1x128x256xf32> to vector<128x256xf32>
    %cst_5 = arith.constant dense<0.000000e+00> : vector<16x128xf32>
    %9 = tpu.matmul %3, %8, %cst_5 {dimension_numbers = #tpu.dot_dimension_numbers<[1], [1], [0], [0], [0, 0, 1, 0], [], []>} : vector<16x256xf32>, vector<128x256xf32>, vector<16x128xf32> -> vector<16x128xf32>
    %10 = arith.maximumf %6, %9 : vector<16x128xf32>
    %c2 = arith.constant 2 : index
    %c0_6 = arith.constant 0 : index
    %c0_7 = arith.constant 0 : index
    %11 = vector.load %arg3[%c2, %c0_6, %c0_7] : memref<3x128x256xf32, #tpu.memory_space<vmem>>, vector<1x128x256xf32>
    %12 = vector.shape_cast %11 : vector<1x128x256xf32> to vector<128x256xf32>
    %cst_8 = arith.constant dense<0.000000e+00> : vector<16x128xf32>
    %13 = tpu.matmul %3, %12, %cst_8 {dimension_numbers = #tpu.dot_dimension_numbers<[1], [1], [0], [0], [0, 0, 1, 0], [], []>} : vector<16x256xf32>, vector<128x256xf32>, vector<16x128xf32> -> vector<16x128xf32>
    %14 = arith.maximumf %10, %13 : vector<16x128xf32>
    %c0_9 = arith.constant 0 : index
    %c0_10 = arith.constant 0 : index
    %15 = vector.load %arg4[%c0_9, %c0_10] : memref<16x128xf32, #tpu.memory_space<vmem>>, vector<16x128xf32>
    tpu.vector_store %arg4[%c0_9, %c0_10], %14 {strides = array<i32>} : memref<16x128xf32, #tpu.memory_space<vmem>>, vector<16x128xf32>,
    return
  }
  func.func @transform_0(%arg0: i32, %arg1: i32) -> (i32, i32) {
    %c0_i32 = arith.constant 0 : i32
    %c0_i32_0 = arith.constant 0 : i32
    %c0_i32_1 = arith.constant 0 : i32
    return %c0_i32, %c0_i32_0 : i32, i32
  }
  func.func @transform_1(%arg0: i32, %arg1: i32) -> (i32, i32, i32) {
    %c0_i32 = arith.constant 0 : i32
    %c0_i32_0 = arith.constant 0 : i32
    %c0_i32_1 = arith.constant 0 : i32
    return %c0_i32, %arg0, %c0_i32_0 : i32, i32, i32
  }
  func.func @transform_2(%arg0: i32, %arg1: i32) -> (i32, i32) {
    %c0_i32 = arith.constant 0 : i32
    return %arg1, %arg0 : i32, i32
  }
}

</mosaic_0001>

<bundles_post_ra>
// kernel: tpu_custom_call.1
= control target key start
LH: loop header
LB: loop body
LE: loop exit
PB: predicated region body
PF: predicated region fallthrough
CT: control target
= control target key end

     0   :  { %7 = vsyncpa [#allocation3], 0  ;;  %s1399_s0 = inlined_call_operand.hbm [shape: f32[16,256], index: 0, kind: input, shape index: {}]   ;;  %s1400_s1 = inlined_call_operand.hbm [shape: f32[3,384,256], index: 1, kind: input, shape index: {}]   ;;  %s1401_s2 = inlined_call_operand.hbm [shape: f32[16,384], index: 2, kind: output, shape index: {}]  }
   0x1   :  { %8 = vsyncpa [#allocation6], 0 }
   0x2   :  { %10 = vsyncpa [#allocation6 + $0x1], 0 }
   0x3   :  { %11 = vsyncpa [#allocation4], 0 }
   0x4   :  { %13 = vsyncpa [#allocation4 + $0x1], 0  ;;  %s1096_s9 = smov 0   ;;  %s1098_s10 = smov 0  }
   0x5   :  { %s1100_s11 = smov 0   ;;  %s1102_s12 = smov 0  }
   0x6   :  { %s1104_s13 = smov 0   ;;  %s1106_s14 = smov 0  }
   0x7 LB: > { %s671_s15 = sadd.s32 4294967295, %s1067_s14   ;;  %s672_s16 = sadd.s32 4294967294, %s1067_s14   ;;  %s1067_s14 = sphi %s1106_s14, %s19_s14   ;;  %s1063_s13 = sphi %s1104_s13, %s1425_s13   ;;  %s1059_s12 = sphi %s1102_s12, %s1424_s12   ;;  %s1055_s11 = sphi %s1100_s11, %s1423_s11   ;;  %s1051_s10 = sphi %s1098_s10, %s1422_s10   ;;  %s1047_s9 = sphi %s1096_s9, %s1421_s9  }
   0x8   : > { %s31_s17 = sadd.s32 1, %s1063_s13  ;;  %s59_s18 = sadd.s32 1, %s1055_s11 }
   0x9   : > { %p33_p0 = scmp.ge.s32.totalorder %s31_s17, 3  ;;  %p66_p1 = scmp.ne.s32.totalorder %s1055_s11, %s1051_s10 }
   0xa   : > { %p67_p2 = scmp.eq.s32.totalorder %s1067_s14, 0  ;;  %p72_p3 = scmp.ne.s32.totalorder %s1051_s10, %s1047_s9 }
   0xb   : > { %s1427_s17 = smov (%p33_p0, %s31_s17), 0  ;;  %p1141_p5 = scmp.eq.s32.totalorder %s671_s15, 0 }
   0xc   : > { %p1137_p4 = por %p67_p2, %p66_p1  ;;  %s56_s21 = ssub.s32 %s1063_s13, %s1427_s17 }
   0xd   : > { %s1409_s20 = scalar_select %p1141_p5, 1, 0 }
   0xe   : > { %s1408_s19 = scalar_select %p1137_p4, 1, 0 }
   0xf   : > { %p98_p6 = scmp.eq.s32.totalorder %s671_s15, 2  ;;  %p57_p7 = scmp.eq.s32.totalorder %s56_s21, 0 }
  0x10   : > { %p1149_p8 = por %p1141_p5, %p72_p3  ;;  %p104_p10 = scmp.eq.s32.totalorder %s672_s16, 2 }
  0x11   : > { %p1153_p9 = por %p98_p6, %p66_p1  ;;  %p673_p12 = scmp.ge.s32.totalorder %s1067_s14, 1 }
  0x12   : > { %s1410_s22 = scalar_select %p1149_p8, 1, 0 }
  0x13   : > { %s1411_s23 = scalar_select %p1153_p9, 1, 0 }
  0x14   : > { %s1158_s24 = scalar_select %p57_p7, %s1055_s11, %s59_s18  }
  0x15   : > { %p1160_p11 = por %p104_p10, %p72_p3  ;;  %p111_p13 = scmp.lt.s32.totalorder %s1067_s14, 4 }
  0x16   : > { %s1069_s27 = smov [#allocation2]   ;;  %s953_s4 = scalar_lea.hbm %s1399_s0, 512 }
  0x17   : > { %s1412_s25 = scalar_select %p1160_p11, 1, 0 }
  0x18   : > { %p1166_p0 = pnand %p673_p12, %p111_p13  ;;  %s123_s28 = sshll.u32 %s1069_s27, 4  ;;  %s124_s28 = int_to_ptr.vmem [resolvable:$true] %s123_s28 }
  0x19   : > { %p954_p3 = scmp.ne.s32.totalorder %s1399_s0, %s953_s4  ;;  %p960_p12 = scmp.lt.u32.totalorder %s953_s4, %s1399_s0 }
  0x1a   : > { %s1413_s26 = scalar_select %p1166_p0, 1, 0 }
  0x1b   : > { %p883_p1 = pneg %p1166_p0 }
  0x1d   : > { %p1174_p2 = pnand %p883_p1, %p1141_p5 }
  0x1f   : > { %p955_p6 = pneg %p1174_p2 }
  0x21   : > { %p956_p7 = pnand %p955_p6, %p954_p3 }
  0x23   : > { %p957_p10 = pneg %p956_p7 }
  0x25   : > { %p962_p13 = pnand %p960_p12, %p957_p10 }
  0x27   : > { %965 = shalt.err (!%p962_p13)
}
  0x28   : > { %s966_s15 = scalar_lea.vmem %s124_s28, 512  ;;  %p974_p8 = scmp.lt.s32.totalorder %s124_s28, %s124_s28 }
  0x29   : > { %p967_p1 = scmp.ne.s32.totalorder %s124_s28, %s966_s15  ;;  %p975_p5 = scmp.lt.s32.totalorder %s966_s15, %s966_s15 }
  0x2b   : > { %p969_p11 = pnand %p967_p1, %p955_p6  ;;  %p976_p0 = por %p975_p5, %p974_p8 }
  0x2d   : > { %p970_p9 = pneg %p969_p11 }
  0x2f   : > { %p977_p4 = pnand %p976_p0, %p970_p9 }
  0x31   : > { %980 = shalt.err (!%p977_p4)
}
  0x32   : > { %s1070_s16 = smov 256   ;;  %s1071_s18 = smov 16  }
  0x33   : > { %886 = dma.hbm_to_vmem [thread:$0]  (!%p1174_p2), %s1399_s0, 512, %s124_s28, [#allocation3], %s1070_s16, %s1070_s16, %s1071_s18  }
  0x34   : > { %p675_p3 = scmp.ge.s32.totalorder %s1067_s14, 3 }
  0x36   : > { %133 = sbr.rel (%p675_p3) target bundleno = 77 (0x4d), region = 20 }
  0x3d   : > { %s137_s30 = sand.u32 1, %s1055_s11   ;;  %s753_s4 = sshll.u32 %s1063_s13, 12 }
  0x3e   : > { %s866_s3 = smul.u32 768, %s137_s30  ;;  %s1072_s29 = smov 12288  }
  0x3f   : > { %p1415_p4 = scmp.ne.s32.totalorder %s1408_s19, 0  ;;  %s1073_s8 = smov 4096  }
  0x40   : > { %s141_s6 = scalar_lea.vmem [#allocation5], %s866_s3  ;;  %s1074_s15 = smov 16  }
  0x41   : > { %871 = sst [smem:[#allocation9]] (%p1415_p4), %s1072_s29  ;;  %s161_s7 = sshll.u32 %s141_s6, 4  ;;  %s162_s7 = int_to_ptr.vmem [resolvable:$true] %s161_s7 }
  0x42   : > { %s870_s28 = scalar_select %p1415_p4, [#allocation0], [#allocation10] }
  0x43   : > { %872 = sst [smem:[#allocation9 + $0x1]] (%p1415_p4), %s1073_s8  ;;  %s148_s21 = scalar_lea.hbm %s1400_s1, %s753_s4 }
  0x44   : > { %s153_s5 = sld [smem:[%s870_s28]]   ;;  %s1075_s27 = smov 256  }
  0x45   : > { %873 = sst [smem:[#allocation9 + $0x2]] (%p1415_p4), %s1074_s15  ;;  %s138_s28 = scalar_lea.sflag [#allocation6], %s137_s30 }
  0x46   : > { %874 = sst [smem:[#allocation9 + $0x3]] (%p1415_p4), %s1075_s27  ;;  %s1076_s6 = smov [#allocation8]  }
  0x47   : > { %875 = sst [smem:[#allocation9 + $0x4]] (%p1415_p4), %s1075_s27 }
  0x48   : > { %876 = sst [smem:[#allocation9 + $0x5]] (%p1415_p4), %s1074_s15 }
  0x4a   : > { %s679_s3 = sshll.u32 %s153_s5, 26 }
  0x4b   : > { %s680_s29 = sadd.s32 134217728, %s679_s3 }
  0x4c   : > { %877 = dma.general (%p1415_p4), %s148_s21, 12288, %s162_s7, %s138_s28, %s1076_s6, [#allocation9], %s680_s29, 0  }
  0x4d PF: > { %p1416_p5 = scmp.ne.s32.totalorder %s1413_s26, 0 }
  0x4e   : > { %p1417_p8 = scmp.ne.s32.totalorder (!%p1416_p5), %s1409_s20, 0 }
  0x4f   : > { %186 = sbr.rel (%p1416_p5) target bundleno = 455 (0x1c7), region = 28 }
  0x56   : > { %1034 = dma.done.wait (%p1417_p8), [#allocation3], 512  }
  0x57   : > { %1036 = vsyncadd (%p1417_p8), [#allocation3], 4294966784  ;;  %s1223_s4 = sand.u32 1, %s1051_s10   ;;  %p1418_p9 = scmp.ne.s32.totalorder %s1410_s22, 0 }
  0x58   : > { %s867_s30 = smul.u32 768, %s1223_s4  ;;  %s193_s5 = scalar_lea.sflag [#allocation6], %s1223_s4 }
  0x5a   : > { %s1227_s19 = scalar_lea.vmem [#allocation5], %s867_s30 }
  0x5b   : > { %1038 = dma.done.wait (%p1418_p9), %s193_s5, 12288  }
  0x5c   : > { %1040 = vsyncadd (%p1418_p9), %s193_s5, 4294955008  ;;  %v230_v0 = vld [vmem:[%s1227_s19 + $0x8] sm:$0xff]  ;;  %v232_v1 = vld [vmem:[%s1227_s19 + $0x18] sm:$0xff]  ;;  %s683_s20 = sshll.u32 %s1223_s4, 4  ;;  %s749_s7 = sshll.u32 %s1059_s12, 7 }
  0x5d   : > { %v685_v2 = vld [vmem:[%s1227_s19 + $0x108] sm:$0xff]  ;;  %v754_v3 = vpack.c.bf16 %v232_v1, %v230_v0  ;;  %v687_v4 = vld [vmem:[%s1227_s19 + $0x118] sm:$0xff]  ;;  %v229_v5 = vld [vmem:[%s1227_s19] sm:$0xff]  ;;  %s216_s22 = scalar_lea.vmem [#allocation7], %s683_s20  ;;  %s1351_s16 = scalar_lea.hbm %s1401_s2, %s749_s7 }
  0x5e   : > { %v231_v6 = vld [vmem:[%s1227_s19 + $0x10] sm:$0xff]  ;;  %v786_v7 = vpack.c.bf16 %v687_v4, %v685_v2  ;;  %v684_v9 = vld [vmem:[%s1227_s19 + $0x100] sm:$0xff]  ;;  %v234_v11 = vld [vmem:[%s1227_s19 + $0x28] sm:$0xff]  ;;  %s574_s26 = sshll.u32 %s216_s22, 4  ;;  %s559_s18 = scalar_lea.sflag [#allocation4], %s1223_s4  ;;  %s1346_s26 = int_to_ptr.vmem [resolvable:$true] %s574_s26 }
  0x5f   : > { %v756_v8 = vpack.c.bf16 %v231_v6, %v229_v5  ;;  %v686_v10 = vld [vmem:[%s1227_s19 + $0x110] sm:$0xff]  ;;  %755 = vmatprep.subr.bf16.mxu0 %v754_v3  ;;  %v236_v13 = vld [vmem:[%s1227_s19 + $0x38] sm:$0xff]  ;;  %v689_v14 = vld [vmem:[%s1227_s19 + $0x128] sm:$0xff]  ;;  %s981_s12 = scalar_lea.vmem %s1346_s26, 256  ;;  %p1419_p0 = scmp.ne.s32.totalorder %s1411_s23, 0 }
  0x60   : > { %v788_v12 = vpack.c.bf16 %v686_v10, %v684_v9  ;;  %v691_v15 = vld [vmem:[%s1227_s19 + $0x138] sm:$0xff]  ;;  %787 = vmatprep.subr.bf16.mxu1 %v786_v7  ;;  %v758_v16 = vpack.c.bf16 %v236_v13, %v234_v11  ;;  %v233_v18 = vld [vmem:[%s1227_s19 + $0x20] sm:$0xff]  ;;  %v235_v19 = vld [vmem:[%s1227_s19 + $0x30] sm:$0xff]  ;;  %p982_p11 = scmp.ne.s32.totalorder %s1346_s26, %s981_s12  ;;  %s1077_s21 = smov [#allocation7]  }
  0x61   : > { %757 = vmatpush1.bf16.xpose.msra.mxu0 %v756_v8  ;;  %v790_v17 = vpack.c.bf16 %v691_v15, %v689_v14  ;;  %v688_v20 = vld [vmem:[%s1227_s19 + $0x120] sm:$0xff]  ;;  %v690_v21 = vld [vmem:[%s1227_s19 + $0x130] sm:$0xff]  ;;  %v238_v22 = vld [vmem:[%s1227_s19 + $0x48] sm:$0xff]  ;;  %v760_v26 = vpack.c.bf16 %v235_v19, %v233_v18  ;;  %s985_s27 = sshll.u32 %s1077_s21, 4  ;;  %s986_s27 = int_to_ptr.vmem [resolvable:$false] %s985_s27 }
  0x62   : > { %789 = vmatpush1.bf16.xpose.msra.mxu1 %v788_v12  ;;  %759 = vmatprep.subr.bf16.mxu0 %v758_v16  ;;  %v240_v23 = vld [vmem:[%s1227_s19 + $0x58] sm:$0xff]  ;;  %v693_v24 = vld [vmem:[%s1227_s19 + $0x148] sm:$0xff]  ;;  %v792_v27 = vpack.c.bf16 %v690_v21, %v688_v20  ;;  %v237_v30 = vld [vmem:[%s1227_s19 + $0x40] sm:$0xff]  ;;  %p983_p2 = pnand %p982_p11, %p1419_p0  ;;  %s987_s3 = scalar_lea.vmem %s986_s27, 512 }
  0x63   : > { %791 = vmatprep.subr.bf16.mxu1 %v790_v17  ;;  %v695_v25 = vld [vmem:[%s1227_s19 + $0x158] sm:$0xff]  ;;  %v762_v28 = vpack.c.bf16 %v240_v23, %v238_v22  ;;  %v239_v31 = vld [vmem:[%s1227_s19 + $0x50] sm:$0xff]  ;;  %v692_v32 = vld [vmem:[%s1227_s19 + $0x140] sm:$0xff]  ;;  %p988_p7 = scmp.lt.s32.totalorder %s1346_s26, %s986_s27  ;;  %p989_p10 = scmp.lt.s32.totalorder %s987_s3, %s981_s12 }
  0x64   : > { %v794_v29 = vpack.c.bf16 %v695_v25, %v693_v24  ;;  %v694_v33 = vld [vmem:[%s1227_s19 + $0x150] sm:$0xff]  ;;  %v242_v34 = vld [vmem:[%s1227_s19 + $0x68] sm:$0xff]  ;;  %v244_v35 = vld [vmem:[%s1227_s19 + $0x78] sm:$0xff]  ;;  %v764_v38 = vpack.c.bf16 %v239_v31, %v237_v30  ;;  %p984_p6 = pneg %p983_p2 }
  0x65   : > { %v697_v36 = vld [vmem:[%s1227_s19 + $0x168] sm:$0xff]  ;;  %v699_v37 = vld [vmem:[%s1227_s19 + $0x178] sm:$0xff]  ;;  %v796_v39 = vpack.c.bf16 %v694_v33, %v692_v32  ;;  %v766_v40 = vpack.c.bf16 %v244_v35, %v242_v34  ;;  %v241_v42 = vld [vmem:[%s1227_s19 + $0x60] sm:$0xff]  ;;  %p990_p12 = por %p989_p10, %p988_p7 }
  0x66   : > { %v798_v41 = vpack.c.bf16 %v699_v37, %v697_v36  ;;  %v243_v43 = vld [vmem:[%s1227_s19 + $0x70] sm:$0xff]  ;;  %v696_v44 = vld [vmem:[%s1227_s19 + $0x160] sm:$0xff]  ;;  %v1264_v45 = vld [vmem:[#allocation2 + $0x8] sm:$0xff] }
  0x67   : > { %v698_v46 = vld [vmem:[%s1227_s19 + $0x170] sm:$0xff]  ;;  %v246_v47 = vld [vmem:[%s1227_s19 + $0x88] sm:$0xff]  ;;  %v248_v48 = vld [vmem:[%s1227_s19 + $0x98] sm:$0xff]  ;;  %325 = vmatprep.mubr.f32.mxu0 %v1264_v45  ;;  %433 = vmatprep.mubr.f32.mxu1 %v1264_v45  ;;  %v768_v51 = vpack.c.bf16 %v243_v43, %v241_v42  ;;  %p991_p13 = pnand %p990_p12, %p984_p6 }
  0x68   : > { %v701_v49 = vld [vmem:[%s1227_s19 + $0x188] sm:$0xff]  ;;  %v703_v50 = vld [vmem:[%s1227_s19 + $0x198] sm:$0xff]  ;;  %v800_v52 = vpack.c.bf16 %v698_v46, %v696_v44  ;;  %v770_v53 = vpack.c.bf16 %v248_v48, %v246_v47  ;;  %v245_v55 = vld [vmem:[%s1227_s19 + $0x80] sm:$0xff] }
  0x69   : > { %761 = vmatpush1.bf16.xpose.msra.mxu0 %v760_v26  ;;  %v802_v54 = vpack.c.bf16 %v703_v50, %v701_v49  ;;  %v247_v56 = vld [vmem:[%s1227_s19 + $0x90] sm:$0xff]  ;;  %v700_v57 = vld [vmem:[%s1227_s19 + $0x180] sm:$0xff]  ;;  %v250_v59 = vld [vmem:[%s1227_s19 + $0xa8] sm:$0xff] }
  0x6a   : > { %793 = vmatpush1.bf16.xpose.msra.mxu1 %v792_v27  ;;  %763 = vmatprep.subr.bf16.mxu0 %v762_v28  ;;  %v702_v58 = vld [vmem:[%s1227_s19 + $0x190] sm:$0xff]  ;;  %v252_v60 = vld [vmem:[%s1227_s19 + $0xb8] sm:$0xff]  ;;  %v705_v61 = vld [vmem:[%s1227_s19 + $0x1a8] sm:$0xff]  ;;  %v772_v63 = vpack.c.bf16 %v247_v56, %v245_v55 }
  0x6b   : > { %795 = vmatprep.subr.bf16.mxu1 %v794_v29  ;;  %v707_v62 = vld [vmem:[%s1227_s19 + $0x1b8] sm:$0xff]  ;;  %v804_v0 = vpack.c.bf16 %v702_v58, %v700_v57  ;;  %v774_v1 = vpack.c.bf16 %v252_v60, %v250_v59  ;;  %v249_v3 = vld [vmem:[%s1227_s19 + $0xa0] sm:$0xff]  ;;  %v251_v4 = vld [vmem:[%s1227_s19 + $0xb0] sm:$0xff] }
  0x6c   : > { %v806_v2 = vpack.c.bf16 %v707_v62, %v705_v61  ;;  %v704_v5 = vld [vmem:[%s1227_s19 + $0x1a0] sm:$0xff]  ;;  %v706_v6 = vld [vmem:[%s1227_s19 + $0x1b0] sm:$0xff]  ;;  %v254_v7 = vld [vmem:[%s1227_s19 + $0xc8] sm:$0xff]  ;;  %v776_v11 = vpack.c.bf16 %v251_v4, %v249_v3 }
  0x6d   : > { %v256_v8 = vld [vmem:[%s1227_s19 + $0xd8] sm:$0xff]  ;;  %v709_v9 = vld [vmem:[%s1227_s19 + $0x1c8] sm:$0xff]  ;;  %v808_v12 = vpack.c.bf16 %v706_v6, %v704_v5  ;;  %v253_v15 = vld [vmem:[%s1227_s19 + $0xc0] sm:$0xff] }
  0x6e   : > { %v711_v10 = vld [vmem:[%s1227_s19 + $0x1d8] sm:$0xff]  ;;  %v778_v13 = vpack.c.bf16 %v256_v8, %v254_v7  ;;  %v255_v16 = vld [vmem:[%s1227_s19 + $0xd0] sm:$0xff]  ;;  %v708_v17 = vld [vmem:[%s1227_s19 + $0x1c0] sm:$0xff] }
  0x6f   : > { %v810_v14 = vpack.c.bf16 %v711_v10, %v709_v9  ;;  %v710_v18 = vld [vmem:[%s1227_s19 + $0x1d0] sm:$0xff]  ;;  %v258_v19 = vld [vmem:[%s1227_s19 + $0xe8] sm:$0xff]  ;;  %v260_v20 = vld [vmem:[%s1227_s19 + $0xf8] sm:$0xff]  ;;  %v780_v23 = vpack.c.bf16 %v255_v16, %v253_v15 }
  0x70   : > { %v713_v21 = vld [vmem:[%s1227_s19 + $0x1e8] sm:$0xff]  ;;  %v715_v22 = vld [vmem:[%s1227_s19 + $0x1f8] sm:$0xff]  ;;  %v812_v24 = vpack.c.bf16 %v710_v18, %v708_v17  ;;  %v782_v25 = vpack.c.bf16 %v260_v20, %v258_v19  ;;  %v257_v27 = vld [vmem:[%s1227_s19 + $0xe0] sm:$0xff] }
  0x71   : > { %765 = vmatpush1.bf16.xpose.msra.mxu0 %v764_v38  ;;  %v814_v26 = vpack.c.bf16 %v715_v22, %v713_v21  ;;  %v259_v28 = vld [vmem:[%s1227_s19 + $0xf0] sm:$0xff]  ;;  %v712_v29 = vld [vmem:[%s1227_s19 + $0x1e0] sm:$0xff]  ;;  %v717_v31 = vld [vmem:[%s1227_s19 + $0x208] sm:$0xff] }
  0x72   : > { %797 = vmatpush1.bf16.xpose.msra.mxu1 %v796_v39  ;;  %767 = vmatprep.subr.bf16.mxu0 %v766_v40  ;;  %v714_v30 = vld [vmem:[%s1227_s19 + $0x1f0] sm:$0xff]  ;;  %v719_v32 = vld [vmem:[%s1227_s19 + $0x218] sm:$0xff]  ;;  %v784_v33 = vpack.c.bf16 %v259_v28, %v257_v27  ;;  %v716_v36 = vld [vmem:[%s1227_s19 + $0x200] sm:$0xff] }
  0x73   : > { %799 = vmatprep.subr.bf16.mxu1 %v798_v41  ;;  %v816_v34 = vpack.c.bf16 %v714_v30, %v712_v29  ;;  %v818_v35 = vpack.c.bf16 %v719_v32, %v717_v31  ;;  %v718_v37 = vld [vmem:[%s1227_s19 + $0x210] sm:$0xff]  ;;  %v721_v38 = vld [vmem:[%s1227_s19 + $0x228] sm:$0xff]  ;;  %v723_v39 = vld [vmem:[%s1227_s19 + $0x238] sm:$0xff] }
  0x74   : > { %v1307_v40 = vld [vmem:[#allocation2] sm:$0xff]  ;;  %v820_v41 = vpack.c.bf16 %v718_v37, %v716_v36  ;;  %v822_v42 = vpack.c.bf16 %v723_v39, %v721_v38  ;;  %v228_v43 = vld [vmem:[#allocation2 + $0x18] sm:$0xff]  ;;  %v1311_v44 = vld [vmem:[#allocation2 + $0x10] sm:$0xff] }
  0x75   : > { %v720_v46 = vld [vmem:[%s1227_s19 + $0x220] sm:$0xff]  ;;  %v722_v47 = vld [vmem:[%s1227_s19 + $0x230] sm:$0xff]  ;;  %v725_v48 = vld [vmem:[%s1227_s19 + $0x248] sm:$0xff] }
  0x76   : > { %v727_v49 = vld [vmem:[%s1227_s19 + $0x258] sm:$0xff]  ;;  %v824_v50 = vpack.c.bf16 %v722_v47, %v720_v46  ;;  %v730_v58 = vld [vmem:[%s1227_s19 + $0x270] sm:$0xff]  ;;  %v733_v59 = vld [vmem:[%s1227_s19 + $0x288] sm:$0xff] }
  0x77   : > { %v731_v55 = vld [vmem:[%s1227_s19 + $0x278] sm:$0xff]  ;;  %v736_v5 = vld [vmem:[%s1227_s19 + $0x2a0] sm:$0xff]  ;;  %v738_v6 = vld [vmem:[%s1227_s19 + $0x2b0] sm:$0xff] }
  0x78   : > { %v735_v60 = vld [vmem:[%s1227_s19 + $0x298] sm:$0xff]  ;;  %v741_v7 = vld [vmem:[%s1227_s19 + $0x2c8] sm:$0xff]  ;;  %v840_v9 = vpack.c.bf16 %v738_v6, %v736_v5  ;;  %v744_v17 = vld [vmem:[%s1227_s19 + $0x2e0] sm:$0xff] }
  0x79   : > { %769 = vmatpush1.bf16.xpose.msra.mxu0 %v768_v51  ;;  %v826_v51 = vpack.c.bf16 %v727_v49, %v725_v48  ;;  %v834_v62 = vpack.c.bf16 %v735_v60, %v733_v59  ;;  %v743_v8 = vld [vmem:[%s1227_s19 + $0x2d8] sm:$0xff]  ;;  %v746_v18 = vld [vmem:[%s1227_s19 + $0x2f0] sm:$0xff] }
  0x7a   : > { %801 = vmatpush1.bf16.xpose.msra.mxu1 %v800_v52  ;;  %771 = vmatprep.subr.bf16.mxu0 %v770_v53  ;;  %v724_v52 = vld [vmem:[%s1227_s19 + $0x240] sm:$0xff]  ;;  %v726_v53 = vld [vmem:[%s1227_s19 + $0x250] sm:$0xff]  ;;  %v842_v10 = vpack.c.bf16 %v743_v8, %v741_v7  ;;  %v848_v19 = vpack.c.bf16 %v746_v18, %v744_v17 }
  0x7b   : > { %803 = vmatprep.subr.bf16.mxu1 %v802_v54  ;;  %v729_v54 = vld [vmem:[%s1227_s19 + $0x268] sm:$0xff]  ;;  %v828_v56 = vpack.c.bf16 %v726_v53, %v724_v52 }
  0x7c   : > { %v830_v57 = vpack.c.bf16 %v731_v55, %v729_v54 }
  0x81   : > { %773 = vmatpush1.bf16.xpose.msra.mxu0 %v772_v63  ;;  %v732_v63 = vld [vmem:[%s1227_s19 + $0x280] sm:$0xff] }
  0x82   : > { %805 = vmatpush1.bf16.xpose.msra.mxu1 %v804_v0  ;;  %775 = vmatprep.subr.bf16.mxu0 %v774_v1  ;;  %v734_v0 = vld [vmem:[%s1227_s19 + $0x290] sm:$0xff]  ;;  %v737_v1 = vld [vmem:[%s1227_s19 + $0x2a8] sm:$0xff] }
  0x83   : > { %807 = vmatprep.subr.bf16.mxu1 %v806_v2  ;;  %v739_v2 = vld [vmem:[%s1227_s19 + $0x2b8] sm:$0xff]  ;;  %v836_v3 = vpack.c.bf16 %v734_v0, %v732_v63 }
  0x84   : > { %v838_v4 = vpack.c.bf16 %v739_v2, %v737_v1 }
  0x89   : > { %777 = vmatpush1.bf16.xpose.msra.mxu0 %v776_v11  ;;  %v740_v11 = vld [vmem:[%s1227_s19 + $0x2c0] sm:$0xff] }
  0x8a   : > { %809 = vmatpush1.bf16.xpose.msra.mxu1 %v808_v12  ;;  %779 = vmatprep.subr.bf16.mxu0 %v778_v13  ;;  %v742_v12 = vld [vmem:[%s1227_s19 + $0x2d0] sm:$0xff]  ;;  %v745_v13 = vld [vmem:[%s1227_s19 + $0x2e8] sm:$0xff] }
  0x8b   : > { %811 = vmatprep.subr.bf16.mxu1 %v810_v14  ;;  %v747_v14 = vld [vmem:[%s1227_s19 + $0x2f8] sm:$0xff]  ;;  %v844_v15 = vpack.c.bf16 %v742_v12, %v740_v11 }
  0x8c   : > { %v846_v16 = vpack.c.bf16 %v747_v14, %v745_v13 }
  0x91   : > { %781 = vmatpush1.bf16.xpose.msra.mxu0 %v780_v23 }
  0x92   : > { %813 = vmatpush1.bf16.xpose.msra.mxu1 %v812_v24  ;;  %783 = vmatprep.subr.bf16.mxu0 %v782_v25 }
  0x93   : > { %815 = vmatprep.subr.bf16.mxu1 %v814_v26 }
  0x99   : > { %785 = vmatpush1.bf16.xpose.msra.mxu0 %v784_v33 }
  0x9a   : > { %817 = vmatpush1.bf16.xpose.msra.mxu1 %v816_v34  ;;  %819 = vmatprep.subr.bf16.mxu0 %v818_v35 }
  0x9b   : > { %850 = vmatprep.subr.bf16.mxu1 %v818_v35 }
  0xa0   : > { %326 = vmatmul.mubr.f32.vlgmr.msra.gmra.mrb[0].mxu0 %v1307_v40 }
  0xa1   : > { %434 = vmatmul.mubr.f32.vlgmr.msra.gmra.mrb[0].mxu1 %v1307_v40  ;;  %821 = vmatpush1.bf16.xpose.msra.mxu0 %v820_v41 }
  0xa2   : > { %858 = vmatpush1.bf16.xpose.msra.mxu1 %v820_v41  ;;  %823 = vmatprep.subr.bf16.mxu0 %v822_v42 }
  0xa3   : > { %851 = vmatprep.subr.bf16.mxu1 %v822_v42  ;;  %330 = vmatprep.mubr.f32.mxu0 %v228_v43 }
  0xa4   : > { %438 = vmatprep.mubr.f32.mxu1 %v228_v43  ;;  %331 = vmatmul.mubr.f32.gmra.mrb[2].mxu0 %v1311_v44 }
  0xa5   : > { %439 = vmatmul.mubr.f32.gmra.mrb[2].mxu1 %v1311_v44  ;;  %543 = vmatprep.mubr.f32.mxu0 %v1264_v45  ;;  %v728_v45 = vld [vmem:[%s1227_s19 + $0x260] sm:$0xff] }
  0xa6   : > { %548 = vmatprep.mubr.f32.mxu1 %v228_v43  ;;  %v832_v61 = vpack.c.bf16 %v730_v58, %v728_v45 }
  0xa9   : > { %825 = vmatpush1.bf16.xpose.msra.mxu0 %v824_v50 }
  0xaa   : > { %859 = vmatpush1.bf16.xpose.msra.mxu1 %v824_v50  ;;  %827 = vmatprep.subr.bf16.mxu0 %v826_v51 }
  0xab   : > { %852 = vmatprep.subr.bf16.mxu1 %v826_v51 }
  0xb1   : > { %829 = vmatpush1.bf16.xpose.msra.mxu0 %v828_v56 }
  0xb2   : > { %860 = vmatpush1.bf16.xpose.msra.mxu1 %v828_v56  ;;  %831 = vmatprep.subr.bf16.mxu0 %v830_v57 }
  0xb3   : > { %853 = vmatprep.subr.bf16.mxu1 %v830_v57 }
  0xb9   : > { %833 = vmatpush1.bf16.xpose.msra.mxu0 %v832_v61 }
  0xba   : > { %861 = vmatpush1.bf16.xpose.msra.mxu1 %v832_v61  ;;  %835 = vmatprep.subr.bf16.mxu0 %v834_v62 }
  0xbb   : > { %854 = vmatprep.subr.bf16.mxu1 %v834_v62 }
  0xc1   : > { %837 = vmatpush1.bf16.xpose.msra.mxu0 %v836_v3 }
  0xc2   : > { %862 = vmatpush1.bf16.xpose.msra.mxu1 %v836_v3  ;;  %839 = vmatprep.subr.bf16.mxu0 %v838_v4 }
  0xc3   : > { %855 = vmatprep.subr.bf16.mxu1 %v838_v4 }
  0xc9   : > { %841 = vmatpush1.bf16.xpose.msra.mxu0 %v840_v9 }
  0xca   : > { %863 = vmatpush1.bf16.xpose.msra.mxu1 %v840_v9  ;;  %843 = vmatprep.subr.bf16.mxu0 %v842_v10 }
  0xcb   : > { %856 = vmatprep.subr.bf16.mxu1 %v842_v10 }
  0xd1   : > { %845 = vmatpush1.bf16.xpose.msra.mxu0 %v844_v15 }
  0xd2   : > { %864 = vmatpush1.bf16.xpose.msra.mxu1 %v844_v15  ;;  %847 = vmatprep.subr.bf16.mxu0 %v846_v16 }
  0xd3   : > { %857 = vmatprep.subr.bf16.mxu1 %v846_v16 }
  0xd9   : > { %849 = vmatpush1.bf16.xpose.msra.mxu0 %v848_v19 }
  0xda   : > { %865 = vmatpush1.bf16.xpose.msra.mxu1 %v848_v19 }
  0xe0   : > { %544 = vmatmul.mubr.f32.vlgmr.msra.gmra.mrb[4].mxu0 %v1307_v40 }
  0xe1   : > { %549 = vmatmul.mubr.f32.vlgmr.msra.gmra.mrb[4].mxu1 %v1311_v44 }
 0x173   : > { %v327_v20 = vpop.f32.mrb[0].mxu0 }
 0x174   : > { %v435_v21 = vpop.f32.mrb[0].mxu1  ;;  %v329_v22 = vpop.f32.mrb[1].mxu0 }
 0x175   : > { %v444_v23 = vmax.f32 %v327_v20, %v435_v21  ;;  %v437_v24 = vpop.f32.mrb[1].mxu1 }
 0x177   : > { %v332_v25 = vpop.f32.mrb[2].mxu0 }
 0x178   : > { %v440_v26 = vpop.f32.mrb[2].mxu1  ;;  %v334_v27 = vpop.f32.mrb[3].mxu0 }
 0x179   : > { %v445_v28 = vmax.f32 %v332_v25, %v440_v26  ;;  %v442_v29 = vpop.f32.mrb[3].mxu1 }
 0x1b3   : > { %v545_v30 = vpop.f32.mrb[4].mxu0 }
 0x1b4   : > { %v554_v31 = vmax.f32 %v444_v23, %v545_v30  ;;  %v550_v32 = vpop.f32.mrb[4].mxu1  ;;  %v547_v33 = vpop.f32.mrb[5].mxu0 }
 0x1b5   : > { %v555_v34 = vmax.f32 %v445_v28, %v550_v32  ;;  %v552_v35 = vpop.f32.mrb[5].mxu1 }
 0x1b6   : > { %556 = vst [vmem:[%s216_s22] sm:$0xff] %v554_v31 }
 0x1b7   : > { %557 = vst [vmem:[%s216_s22 + $0x8] sm:$0xff] %v555_v34 }
 0x1b8   : > { %994 = shalt.err (!%p991_p13)
}
 0x1b9   : > { %s995_s29 = scalar_lea.hbm %s1351_s16, 256  ;;  %s999_s30 = scalar_lea.hbm %s1401_s2, 768 }
 0x1ba   : > { %p996_p1 = scmp.ne.s32.totalorder %s1351_s16, %s995_s29  ;;  %p1000_p5 = scmp.lt.u32.totalorder %s1351_s16, %s1401_s2 }
 0x1bb   : > { %p1001_p8 = scmp.lt.u32.totalorder %s999_s30, %s995_s29  ;;  %p1003_p11 = scmp.lt.u32.totalorder %s995_s29, %s1351_s16 }
 0x1bc   : > { %p997_p3 = pnand %p996_p1, %p1419_p0 }
 0x1bd   : > { %p1002_p9 = por %p1001_p8, %p1000_p5 }
 0x1be   : > { %p998_p4 = pneg %p997_p3 }
 0x1bf   : > { %p1004_p2 = por %p1003_p11, %p1002_p9 }
 0x1c1   : > { %p1005_p6 = pnand %p1004_p2, %p998_p4 }
 0x1c3   : > { %1008 = shalt.err (!%p1005_p6)
}
 0x1c4   : > { %s1078_s20 = smov 128   ;;  %s1079_s22 = smov 384  }
 0x1c5   : > { %s1080_s7 = smov 8  }
 0x1c6   : > { %881 = dma.vmem_to_hbm [thread:$0]  (%p1419_p0), %s1346_s26, 256, %s1351_s16, %s559_s18, %s1078_s20, %s1079_s22, %s1080_s7  }
 0x1c7 PF: > { %p893_p7 = scmp.ge.s32.totalorder %s1067_s14, 2  ;;  %s589_s8 = sand.u32 1, %s1047_s9  }
 0x1c8   : > { %p1420_p10 = scmp.ne.s32.totalorder %s1412_s25, 0  ;;  %s590_s15 = scalar_lea.sflag [#allocation4], %s589_s8 }
 0x1ca   : > { %p888_p12 = pnand %p893_p7, %p1420_p10 }
 0x1cc   : > { %1042 = dma.done.wait (!%p888_p12), %s590_s15, 256  }
 0x1cd   : > { %1044 = vsyncadd (!%p888_p12), %s590_s15, 4294967040  ;;  %s19_s14 = sadd.s32 1, %s1067_s14   ;;  %s1421_s9 = smov %s1051_s10 }
 0x1ce   : > { %p16_p13 = scmp.ge.s32.totalorder %s19_s14, 5   ;;  %s1422_s10 = smov %s1055_s11 }
 0x1cf   : > { %s1423_s11 = smov %s1158_s24  ;;  %s1424_s12 = smov %s1063_s13 }
 0x1d0   : > { %s1425_s13 = smov %s1427_s17  ;;  %18 = sbr.rel (!%p16_p13) target bundleno = 7 (0x7), region = 86 }
 0x1d7   :  { %595 = vsyncpa [#allocation3], 1 }
 0x1d8   :  { %597 = vsyncpa [#allocation3 + $0x1], 1 }
 0x1d9   :  { %598 = vsyncpa [#allocation6], 1 }
 0x1da   :  { %600 = vsyncpa [#allocation6 + $0x1], 1 }
 0x1db   :  { %601 = vsyncpa [#allocation4], 1 }
 0x1dc   :  { %603 = vsyncpa [#allocation4 + $0x1], 1 }

</bundles_post_ra>
